<compile_context>
chip_gen: v7x
topology: tpu7x:2x2x1
jax: 0.10.0
libtpu: 0.0.40
codegen_flags: <defaults>
</compile_context>

<pallas_src>
import functools

import jax
import jax.numpy as jnp
from jax.experimental import pallas as pl
from jax.experimental.pallas import tpu as pltpu

BN_EPS = 1e-5       # nn.BatchNorm1d default eps
NORM_EPS = 1e-12    # F.normalize default eps
LANE = 128


def _round_up(x, m):
    return ((x + m - 1) // m) * m


def _vmem_capacity_bytes():
    """Per-core VMEM capacity; conservative fallback (v7x) if the query fails."""
    try:
        info = pltpu.get_tpu_info()
        cap = getattr(info, "vmem_capacity_bytes", None)
        if cap:
            return int(cap)
    except Exception:
        pass
    return 64 * 1024 * 1024


def _estimate_vmem_bytes(pt, n, c_pad, kt, x_bytes, w_bytes, feat_bytes,
                         logits_bytes, scratch_bytes, w_buffers):
    """Per-step VMEM estimate including pipeline buffers and BN f32 temporaries."""
    return pt * (
        2 * n * c_pad * x_bytes            # x input block (double-buffered)
        + w_buffers * c_pad * kt * w_bytes  # classifier weight tile
        + 2 * 2 * c_pad * 4                 # gamma + beta (double-buffered)
        + 2 * n * c_pad * feat_bytes        # feature output block
        + 2 * n * kt * logits_bytes         # logits output block
        + n * c_pad * scratch_bytes         # feat scratch (single buffer)
        + 3 * n * c_pad * 4                 # BN/normalize f32 temporaries @ ik==0
    )


def _choose_pt(p, vmem_budget, est_fn, min_part_tiles=2):
    """Largest divisor of p that fits the budget, then reduced (if possible) so
    the 'parallel' part axis has >= min_part_tiles steps (keeps both v7x TCs busy).
    """
    divisors = [d for d in range(1, p + 1) if p % d == 0]
    best = 1
    for d in divisors:
        if est_fn(d) <= vmem_budget:
            best = d
    if p >= min_part_tiles:
        while p // best < min_part_tiles:
            best = max(d for d in divisors if d < best)
    return best


def _bnneck_kernel(x_ref, w_ref, gamma_ref, beta_ref, feat_ref, logits_ref,
                   feat_sc, *, norm: bool, normalize_weight: bool, mxu_dtype):
    # x_ref:      (PT, n, Cp)   part-tile activations
    # w_ref:      (PT, Cp, KT)  classifier weight tile
    # gamma_ref:  (PT, 1, Cp)   BN scale (resident across k tiles)
    # beta_ref:   (PT, 1, Cp)   BN shift
    # feat_ref:   (PT, n, Cp)   output feature (written once per part tile)
    # logits_ref: (PT, n, KT)   output logits tile
    # feat_sc:    (PT, n, Cp)   scratch (mxu_dtype) caching the normalized feature
    ik = pl.program_id(1)

    @pl.when(ik == 0)
    def _compute_feature():
        x = x_ref[...].astype(jnp.float32)              # [PT, n, Cp]
        gamma = gamma_ref[...].astype(jnp.float32)      # [PT, 1, Cp]
        beta = beta_ref[...].astype(jnp.float32)        # [PT, 1, Cp]

        # BatchNorm1d (training-mode batch stats, biased variance), single-pass
        # moments, gamma folded into the rsqrt scale, beta folded into the shift.
        mean = jnp.mean(x, axis=1, keepdims=True)                    # [PT,1,Cp]
        meansq = jnp.mean(x * x, axis=1, keepdims=True)              # [PT,1,Cp]
        var = meansq - mean * mean
        scale = gamma * jax.lax.rsqrt(var + BN_EPS)
        shift = beta - mean * scale
        x_bn = x * scale + shift                                     # [PT,n,Cp]

        if norm:
            # F.normalize(feature, dim=-1): rsqrt of clamped squared norm (EUP).
            ssq = jnp.sum(x_bn * x_bn, axis=-1, keepdims=True)       # [PT,n,1]
            feat = x_bn * jax.lax.rsqrt(jnp.maximum(ssq, NORM_EPS * NORM_EPS))
        else:
            feat = x_bn

        feat_ref[...] = feat.astype(feat_ref.dtype)
        feat_sc[...] = feat.astype(feat_sc.dtype)      # cast once; reused per ik

    w = w_ref[...]                                     # [PT, Cp, KT]
    if normalize_weight:
        # F.normalize(fc_bin, dim=1) in-kernel (only when not pre-normalized).
        wf = w.astype(jnp.float32)
        wssq = jnp.sum(wf * wf, axis=1, keepdims=True)  # [PT, 1, KT]
        w = wf * jax.lax.rsqrt(jnp.maximum(wssq, NORM_EPS * NORM_EPS))
    w = w.astype(mxu_dtype)

    # MXU matmul, f32 accumulation; feat scratch is already in mxu_dtype.
    logits = jnp.einsum("pnc,pck->pnk", feat_sc[...], w,
                        preferred_element_type=jnp.float32)          # [PT, n, KT]
    logits_ref[...] = logits.astype(logits_ref.dtype)


def separate_bn_necks(x, fc_bin, bn_gamma, bn_beta, *, norm=True,
                      weight_prenormalized=False, kt=None, mxu_dtype=None,
                      logits_dtype=None, out_layout="ncp", weight_buffers=None):
    """x: [n, c, p]; fc_bin: [p, c, class_num]; bn_gamma/bn_beta: [c*p].

    Returns (feature, logits).  out_layout="ncp" (default) matches the PyTorch
    module: feature [n, c, p], logits [n, class_num, p].  out_layout="pnc"
    skips the lane-sparse transposes and returns [p, n, c] / [p, n, class_num].

    For best throughput cache fc_bin pre-normalized (F.normalize over channels)
    and pre-cast to bf16, and pass weight_prenormalized=True.
    """
    n, c, p = x.shape
    p_w, c_w, k = fc_bin.shape
    assert (p_w, c_w) == (p, c)

    if mxu_dtype is None:
        # bf16 only when values are normalization-bounded; f32 otherwise.
        mxu_dtype = jnp.bfloat16 if norm else jnp.float32
    if logits_dtype is None:
        logits_dtype = x.dtype

    vmem_cap = _vmem_capacity_bytes()
    vmem_limit = int(0.75 * vmem_cap)
    vmem_budget = int(0.5 * vmem_cap)

    if kt is None:
        kt = 512 if vmem_cap >= 100 * 1024 * 1024 else 256

    # Lane-dense padding: channels and classes to multiples of 128 (padding is
    # mathematically inert: padded channels/classes produce exact zeros).
    c_pad = _round_up(c, LANE)
    k128 = _round_up(k, LANE)
    kt = min(_round_up(kt, LANE), k128)
    k_pad = _round_up(k, kt)
    num_kt = k_pad // kt

    x_pnc = jnp.transpose(x, (2, 0, 1))                                  # [p, n, c]
    if c_pad != c:
        x_pnc = jnp.pad(x_pnc, ((0, 0), (0, 0), (0, c_pad - c)))

    # x.view(n, -1) flattens [n,c,p] with feature index = c_idx*p + p_idx,
    # so BN params reshape to [c, p] then transpose to per-part rows.
    gamma_pc = jnp.transpose(bn_gamma.reshape(c, p), (1, 0))             # [p, c]
    beta_pc = jnp.transpose(bn_beta.reshape(c, p), (1, 0))
    if c_pad != c:
        gamma_pc = jnp.pad(gamma_pc, ((0, 0), (0, c_pad - c)), constant_values=1.0)
        beta_pc = jnp.pad(beta_pc, ((0, 0), (0, c_pad - c)))
    gamma_p = gamma_pc[:, None, :]                                       # [p,1,Cp]
    beta_p = beta_pc[:, None, :]

    w = fc_bin                                     # dtype preserved (bf16 if cached)
    if c_pad != c or k_pad != k:
        w = jnp.pad(w, ((0, 0), (0, c_pad - c), (0, k_pad - k)))         # [p,Cp,Kp]

    x_bytes = jnp.dtype(x.dtype).itemsize
    w_bytes = jnp.dtype(w.dtype).itemsize
    feat_bytes = jnp.dtype(x.dtype).itemsize
    logits_bytes = jnp.dtype(logits_dtype).itemsize
    scratch_bytes = jnp.dtype(mxu_dtype).itemsize

    est = functools.partial(_estimate_vmem_bytes, n=n, c_pad=c_pad, kt=kt,
                            x_bytes=x_bytes, w_bytes=w_bytes,
                            feat_bytes=feat_bytes, logits_bytes=logits_bytes,
                            scratch_bytes=scratch_bytes)
    pt = _choose_pt(p, vmem_budget, lambda d: est(d, w_buffers=2))

    if weight_buffers is None:
        # Deeper weight buffering only pays when the k axis is long; verify VMEM.
        weight_buffers = 3 if (num_kt >= 4 and
                               est(pt, w_buffers=3) <= vmem_budget) else 2

    grid = (p // pt, num_kt)
    normalize_weight = bool(norm) and not weight_prenormalized

    def _weight_spec():
        idx_map = lambda ip, ik: (ip, 0, ik)
        if weight_buffers > 2 and hasattr(pl, "Buffered"):
            try:
                return pl.BlockSpec((pt, c_pad, kt), idx_map,
                                    pipeline_mode=pl.Buffered(weight_buffers))
            except TypeError:
                pass
        return pl.BlockSpec((pt, c_pad, kt), idx_map)

    kernel = functools.partial(_bnneck_kernel, norm=norm,
                               normalize_weight=normalize_weight,
                               mxu_dtype=mxu_dtype)

    feat_pnc, logits_pnk = pl.pallas_call(
        kernel,
        out_shape=(jax.ShapeDtypeStruct((p, n, c_pad), x.dtype),
                   jax.ShapeDtypeStruct((p, n, k_pad), logits_dtype)),
        grid_spec=pltpu.PrefetchScalarGridSpec(
            num_scalar_prefetch=0,
            grid=grid,
            in_specs=[
                # constant over ik -> fetched once per part tile, not per k step
                pl.BlockSpec((pt, n, c_pad), lambda ip, ik: (ip, 0, 0)),   # x
                _weight_spec(),                                            # fc_bin
                pl.BlockSpec((pt, 1, c_pad), lambda ip, ik: (ip, 0, 0)),   # gamma
                pl.BlockSpec((pt, 1, c_pad), lambda ip, ik: (ip, 0, 0)),   # beta
            ],
            out_specs=[
                pl.BlockSpec((pt, n, c_pad), lambda ip, ik: (ip, 0, 0)),   # feature
                pl.BlockSpec((pt, n, kt), lambda ip, ik: (ip, 0, ik)),     # logits
            ],
            scratch_shapes=[pltpu.VMEM((pt, n, c_pad), mxu_dtype)],
        ),
        compiler_params=pltpu.CompilerParams(
            dimension_semantics=("parallel", "arbitrary"),
            vmem_limit_bytes=vmem_limit),
    )(x_pnc, w, gamma_p, beta_p)

    feat_pnc = feat_pnc[:, :, :c]
    logits_pnk = logits_pnk[:, :, :k]

    if out_layout == "pnc":
        return feat_pnc, logits_pnk
    feature = jnp.transpose(feat_pnc, (1, 2, 0))    # [n, c, p]
    logits = jnp.transpose(logits_pnk, (1, 2, 0))   # [n, class_num, p]
    return feature, logits


def _reference(x, fc_bin, bn_gamma, bn_beta, norm=True):
    """Pure-JAX reference mirroring the PyTorch forward (training-mode BN, f32)."""
    n, c, p = x.shape
    xf = x.reshape(n, c * p)
    mean = jnp.mean(xf, axis=0, keepdims=True)
    var = jnp.mean((xf - mean) ** 2, axis=0, keepdims=True)
    xf = (xf - mean) / jnp.sqrt(var + BN_EPS) * bn_gamma[None, :] + bn_beta[None, :]
    x_bn = xf.reshape(n, c, p)
    feature = jnp.transpose(x_bn, (2, 0, 1))                   # [p, n, c]
    if norm:
        f_nrm = jnp.linalg.norm(feature, axis=-1, keepdims=True)
        feature = feature / jnp.maximum(f_nrm, NORM_EPS)
        w_nrm = jnp.linalg.norm(fc_bin, axis=1, keepdims=True)
        w = fc_bin / jnp.maximum(w_nrm, NORM_EPS)
    else:
        w = fc_bin
    logits = jnp.einsum('pnc,pck->pnk', feature, w)
    return (jnp.transpose(feature, (1, 2, 0)),
            jnp.transpose(logits, (1, 2, 0)))


if __name__ == "__main__":
    # Small shapes consistent with the module's forward: x is [n, c, p].
    n, c, p, class_num = 8, 32, 4, 256

    key = jax.random.PRNGKey(0)
    kx, kw, kg, kb = jax.random.split(key, 4)

    x = jax.random.normal(kx, (n, c, p), dtype=jnp.float32)

    # Deterministic xavier_uniform-style init for fc_bin [p, c, class_num].
    fan_in = c * class_num
    fan_out = p * class_num
    bound = (6.0 / (fan_in + fan_out)) ** 0.5
    fc_bin = jax.random.uniform(kw, (p, c, class_num), dtype=jnp.float32,
                                minval=-bound, maxval=bound)

    # BatchNorm1d(c*p) affine params (non-trivial values to exercise the math).
    bn_gamma = jax.random.uniform(kg, (c * p,), minval=0.5, maxval=1.5,
                                  dtype=jnp.float32)
    bn_beta = 0.1 * jax.random.normal(kb, (c * p,), dtype=jnp.float32)

    # Simulate a cached classifier parameter: pre-normalized (F.normalize over
    # channels) and pre-cast to bf16 — the dominant HBM stream is halved and the
    # kernel skips the per-step weight-normalization work.
    w_nrm = jnp.linalg.norm(fc_bin, axis=1, keepdims=True)
    fc_bin_prenorm = (fc_bin / jnp.maximum(w_nrm, NORM_EPS)).astype(jnp.bfloat16)

    feature, logits = separate_bn_necks(
        x, fc_bin_prenorm, bn_gamma, bn_beta,
        norm=True, weight_prenormalized=True, kt=128)   # kt=128 -> 2 class tiles
    feature, logits = jax.block_until_ready((feature, logits))

    ref_feature, ref_logits = _reference(x, fc_bin, bn_gamma, bn_beta, norm=True)
    assert feature.shape == (n, c, p) and logits.shape == (n, class_num, p)
    # Feature path is full f32.
    assert jnp.allclose(feature, ref_feature, atol=1e-3, rtol=1e-3)
    # Logits go through bf16 MXU operands (cosine-range values), f32 accumulation.
    assert jnp.allclose(logits, ref_logits, atol=2e-2, rtol=2e-2)

    print("KERNEL_OK")
</pallas_src>

<mosaic_0001>
module attributes {stable_mosaic.version = 11 : i64} {
  func.func @_bnneck_kernel(%arg0: i32, %arg1: i32, %arg2: memref<2x8x128xf32, #tpu.memory_space<vmem>>, %arg3: memref<2x128x128xbf16, #tpu.memory_space<vmem>>, %arg4: memref<2x1x128xf32, #tpu.memory_space<vmem>>, %arg5: memref<2x1x128xf32, #tpu.memory_space<vmem>>, %arg6: memref<2x8x128xf32, #tpu.memory_space<vmem>>, %arg7: memref<2x8x128xf32, #tpu.memory_space<vmem>>, %arg8: memref<2x8x128xbf16, #tpu.memory_space<vmem>>) attributes {dimension_semantics = [#tpu.dimension_semantics<parallel>, #tpu.dimension_semantics<arbitrary>], iteration_bounds = array<i64: 2, 2>, scalar_prefetch = 0 : i64, scratch_operands = 1 : i64, tpu.core_type = #tpu.core_type<tc>, window_params = [{transform_indices = @transform_0, window_bounds = array<i64: 2, 8, 128>}, {transform_indices = @transform_1, window_bounds = array<i64: 2, 128, 128>}, {transform_indices = @transform_2, window_bounds = array<i64: 2, 1, 128>}, {transform_indices = @transform_3, window_bounds = array<i64: 2, 1, 128>}, {transform_indices = @transform_4, window_bounds = array<i64: 2, 8, 128>}, {transform_indices = @transform_5, window_bounds = array<i64: 2, 8, 128>}]} {
    %c0_i32 = arith.constant 0 : i32
    %0 = arith.cmpi eq, %arg1, %c0_i32 : i32
    %1 = arith.extui %0 : i1 to i32
    %c0_i32_0 = arith.constant 0 : i32
    %2 = arith.cmpi ne, %1, %c0_i32_0 : i32
    scf.if %2 {
      %c0_9 = arith.constant 0 : index
      %c0_10 = arith.constant 0 : index
      %c0_11 = arith.constant 0 : index
      %7 = vector.load %arg2[%c0_9, %c0_10, %c0_11] : memref<2x8x128xf32, #tpu.memory_space<vmem>>, vector<2x8x128xf32>
      %c0_12 = arith.constant 0 : index
      %c0_13 = arith.constant 0 : index
      %c0_14 = arith.constant 0 : index
      %8 = vector.load %arg4[%c0_12, %c0_13, %c0_14] : memref<2x1x128xf32, #tpu.memory_space<vmem>>, vector<2x1x128xf32>
      %c0_15 = arith.constant 0 : index
      %c0_16 = arith.constant 0 : index
      %c0_17 = arith.constant 0 : index
      %9 = vector.load %arg5[%c0_15, %c0_16, %c0_17] : memref<2x1x128xf32, #tpu.memory_space<vmem>>, vector<2x1x128xf32>
      %cst_18 = arith.constant dense<0.000000e+00> : vector<2x128xf32>
      %10 = vector.multi_reduction <add>, %7, %cst_18 [1] : vector<2x8x128xf32> to vector<2x128xf32>
      %11 = vector.shape_cast %10 : vector<2x128xf32> to vector<2x1x128xf32>
      %cst_19 = arith.constant 8.000000e+00 : f32
      %12 = vector.broadcast %cst_19 : f32 to vector<2x1x128xf32>
      %13 = arith.divf %11, %12 : vector<2x1x128xf32>
      %14 = arith.mulf %7, %7 : vector<2x8x128xf32>
      %cst_20 = arith.constant dense<0.000000e+00> : vector<2x128xf32>
      %15 = vector.multi_reduction <add>, %14, %cst_20 [1] : vector<2x8x128xf32> to vector<2x128xf32>
      %16 = vector.shape_cast %15 : vector<2x128xf32> to vector<2x1x128xf32>
      %cst_21 = arith.constant 8.000000e+00 : f32
      %17 = vector.broadcast %cst_21 : f32 to vector<2x1x128xf32>
      %18 = arith.divf %16, %17 : vector<2x1x128xf32>
      %19 = arith.mulf %13, %13 : vector<2x1x128xf32>
      %20 = arith.subf %18, %19 : vector<2x1x128xf32>
      %cst_22 = arith.constant 9.99999974E-6 : f32
      %21 = vector.broadcast %cst_22 : f32 to vector<2x1x128xf32>
      %22 = arith.addf %20, %21 : vector<2x1x128xf32>
      %23 = math.rsqrt %22 : vector<2x1x128xf32>
      %24 = arith.mulf %8, %23 : vector<2x1x128xf32>
      %25 = arith.mulf %13, %24 : vector<2x1x128xf32>
      %26 = arith.subf %9, %25 : vector<2x1x128xf32>
      %27 = vector.broadcast %24 : vector<2x1x128xf32> to vector<2x8x128xf32>
      %28 = arith.mulf %7, %27 : vector<2x8x128xf32>
      %29 = vector.broadcast %26 : vector<2x1x128xf32> to vector<2x8x128xf32>
      %30 = arith.addf %28, %29 : vector<2x8x128xf32>
      %31 = arith.mulf %30, %30 : vector<2x8x128xf32>
      %cst_23 = arith.constant dense<0.000000e+00> : vector<2x8xf32>
      %32 = vector.multi_reduction <add>, %31, %cst_23 [2] : vector<2x8x128xf32> to vector<2x8xf32>
      %33 = vector.shape_cast %32 : vector<2x8xf32> to vector<2x8x1xf32>
      %cst_24 = arith.constant 1.000000e-24 : f32
      %34 = vector.broadcast %cst_24 : f32 to vector<2x8x1xf32>
      %35 = arith.maximumf %33, %34 : vector<2x8x1xf32>
      %36 = math.rsqrt %35 : vector<2x8x1xf32>
      %37 = vector.broadcast %36 : vector<2x8x1xf32> to vector<2x8x128xf32>
      %38 = arith.mulf %30, %37 : vector<2x8x128xf32>
      %c0_25 = arith.constant 0 : index
      %c0_26 = arith.constant 0 : index
      %c0_27 = arith.constant 0 : index
      %39 = vector.load %arg6[%c0_25, %c0_26, %c0_27] : memref<2x8x128xf32, #tpu.memory_space<vmem>>, vector<2x8x128xf32>
      tpu.vector_store %arg6[%c0_25, %c0_26, %c0_27], %38 {strides = array<i32>} : memref<2x8x128xf32, #tpu.memory_space<vmem>>, vector<2x8x128xf32>,
      %40 = arith.truncf %38 : vector<2x8x128xf32> to vector<2x8x128xbf16>
      %c0_28 = arith.constant 0 : index
      %c0_29 = arith.constant 0 : index
      %c0_30 = arith.constant 0 : index
      %41 = vector.load %arg8[%c0_28, %c0_29, %c0_30] : memref<2x8x128xbf16, #tpu.memory_space<vmem>>, vector<2x8x128xbf16>
      tpu.vector_store %arg8[%c0_28, %c0_29, %c0_30], %40 {strides = array<i32>} : memref<2x8x128xbf16, #tpu.memory_space<vmem>>, vector<2x8x128xbf16>,
    } else {
    }
    %c0 = arith.constant 0 : index
    %c0_1 = arith.constant 0 : index
    %c0_2 = arith.constant 0 : index
    %3 = vector.load %arg3[%c0, %c0_1, %c0_2] : memref<2x128x128xbf16, #tpu.memory_space<vmem>>, vector<2x128x128xbf16>
    %c0_3 = arith.constant 0 : index
    %c0_4 = arith.constant 0 : index
    %c0_5 = arith.constant 0 : index
    %4 = vector.load %arg8[%c0_3, %c0_4, %c0_5] : memref<2x8x128xbf16, #tpu.memory_space<vmem>>, vector<2x8x128xbf16>
    "tpu.trace_start"() <{level = 10 : i32, message = "pnc,pck->pnk"}> : () -> ()
    %cst = arith.constant dense<0.000000e+00> : vector<2x8x128xf32>
    %5 = tpu.matmul %4, %3, %cst {dimension_numbers = #tpu.dot_dimension_numbers<[2], [1], [1], [2], [0, 0, 0, 1, 1, 2], [0], [0]>} : vector<2x8x128xbf16>, vector<2x128x128xbf16>, vector<2x8x128xf32> -> vector<2x8x128xf32>
    "tpu.trace_stop"() : () -> ()
    %c0_6 = arith.constant 0 : index
    %c0_7 = arith.constant 0 : index
    %c0_8 = arith.constant 0 : index
    %6 = vector.load %arg7[%c0_6, %c0_7, %c0_8] : memref<2x8x128xf32, #tpu.memory_space<vmem>>, vector<2x8x128xf32>
    tpu.vector_store %arg7[%c0_6, %c0_7, %c0_8], %5 {strides = array<i32>} : memref<2x8x128xf32, #tpu.memory_space<vmem>>, vector<2x8x128xf32>,
    return
  }
  func.func @transform_0(%arg0: i32, %arg1: i32) -> (i32, i32, i32) {
    %c0_i32 = arith.constant 0 : i32
    %c0_i32_0 = arith.constant 0 : i32
    %c0_i32_1 = arith.constant 0 : i32
    return %arg0, %c0_i32, %c0_i32_0 : i32, i32, i32
  }
  func.func @transform_1(%arg0: i32, %arg1: i32) -> (i32, i32, i32) {
    %c0_i32 = arith.constant 0 : i32
    %c0_i32_0 = arith.constant 0 : i32
    return %arg0, %c0_i32, %arg1 : i32, i32, i32
  }
  func.func @transform_2(%arg0: i32, %arg1: i32) -> (i32, i32, i32) {
    %c0_i32 = arith.constant 0 : i32
    %c0_i32_0 = arith.constant 0 : i32
    %c0_i32_1 = arith.constant 0 : i32
    return %arg0, %c0_i32, %c0_i32_0 : i32, i32, i32
  }
  func.func @transform_3(%arg0: i32, %arg1: i32) -> (i32, i32, i32) {
    %c0_i32 = arith.constant 0 : i32
    %c0_i32_0 = arith.constant 0 : i32
    %c0_i32_1 = arith.constant 0 : i32
    return %arg0, %c0_i32, %c0_i32_0 : i32, i32, i32
  }
  func.func @transform_4(%arg0: i32, %arg1: i32) -> (i32, i32, i32) {
    %c0_i32 = arith.constant 0 : i32
    %c0_i32_0 = arith.constant 0 : i32
    %c0_i32_1 = arith.constant 0 : i32
    return %arg0, %c0_i32, %c0_i32_0 : i32, i32, i32
  }
  func.func @transform_5(%arg0: i32, %arg1: i32) -> (i32, i32, i32) {
    %c0_i32 = arith.constant 0 : i32
    %c0_i32_0 = arith.constant 0 : i32
    return %arg0, %c0_i32, %arg1 : i32, i32, i32
  }
}

</mosaic_0001>

<bundles_post_ra>
// kernel: tpu_custom_call.1
= control target key start
LH: loop header
LB: loop body
LE: loop exit
PB: predicated region body
PF: predicated region fallthrough
CT: control target
= control target key end

     0   :  { %s1810_s0 = inlined_call_operand.hbm [shape: f32[4,8,128], index: 0, kind: input, shape index: {}]   ;;  %s1811_s1 = inlined_call_operand.hbm [shape: bf16[4,128,256], index: 1, kind: input, shape index: {}]   ;;  %s1812_s2 = inlined_call_operand.vmem [shape: f32[4,1,128], index: 2, kind: input, shape index: {}]   ;;  %s1813_s3 = inlined_call_operand.vmem [shape: f32[4,1,128], index: 3, kind: input, shape index: {}]   ;;  %s1814_s4 = inlined_call_operand.hbm [shape: f32[4,8,128], index: 4, kind: output, shape index: {0}]   ;;  %s1815_s5 = inlined_call_operand.hbm [shape: f32[4,8,256], index: 5, kind: output, shape index: {1}]  }
   0x1   :  { %1836 = sst [smem:[#allocation23_spill]] %s1810_s0 }
   0x2   :  { %1837 = sst [smem:[#allocation24_spill]] %s1811_s1 }
   0x3   :  { %1838 = sst [smem:[#allocation25_spill]] %s1812_s2 }
   0x4   :  { %1839 = sst [smem:[#allocation26_spill]] %s1813_s3 }
   0x5   :  { %1840 = sst [smem:[#allocation27_spill]] %s1814_s4 }
   0x6   :  { %1841 = sst [smem:[#allocation28_spill]] %s1815_s5 }
   0x7   :  { %11 = vsyncpa [#allocation4], 0 }
   0x8   :  { %13 = vsyncpa [#allocation4 + $0x1], 0 }
   0x9   :  { %14 = vsyncpa [#allocation7], 0 }
   0xa   :  { %16 = vsyncpa [#allocation7 + $0x1], 0 }
   0xb   :  { %17 = vsyncpa [#allocation5], 0 }
   0xc   :  { %19 = vsyncpa [#allocation5 + $0x1], 0 }
   0xd   :  { %20 = vsyncpa [#allocation10], 0 }
   0xe   :  { %22 = vsyncpa [#allocation10 + $0x1], 0  ;;  %s1385_s18 = smov 0   ;;  %s1387_s19 = smov 0  }
   0xf   :  { %s1389_s20 = smov 0   ;;  %s1391_s21 = smov 0  }
  0x10   :  { %s1393_s22 = smov 0   ;;  %s1395_s23 = smov 0  }
  0x11   :  { %s1397_s24 = smov 0   ;;  %s1399_s25 = smov 0  }
  0x12   :  { %s1401_s26 = smov 0   ;;  %s1403_s27 = smov 0  }
  0x13   :  { %s1405_s28 = smov 0  }
  0x14 LB: > { %1842 = sst [smem:[#allocation15_spill]] %s1300_s18  ;;  %s866_s29 = sadd.s32 4294967295, %s1340_s28   ;;  %s1340_s28 = sphi %s1405_s28, %s28_s28   ;;  %s1336_s27 = sphi %s1403_s27, %s1903_s27   ;;  %s1332_s26 = sphi %s1401_s26, %s1902_s26   ;;  %s1328_s25 = sphi %s1399_s25, %s1901_s25   ;;  %s1324_s24 = sphi %s1397_s24, %s1900_s24   ;;  %s1320_s23 = sphi %s1395_s23, %s1899_s23   ;;  %s1316_s22 = sphi %s1393_s22, %s1898_s22   ;;  %s1312_s21 = sphi %s1391_s21, %s1897_s21   ;;  %s1308_s20 = sphi %s1389_s20, %s1896_s20   ;;  %s1304_s19 = sphi %s1387_s19, %s1895_s19   ;;  %s1300_s18 = sphi %s1385_s18, %s1894_s18  }
  0x15   : > { %1843 = sst [smem:[#allocation16_spill]] %s1312_s21  ;;  %s867_s30 = sadd.s32 4294967294, %s1340_s28  }
  0x16   : > { %1844 = sst [smem:[#allocation17_spill]] %s1324_s24  ;;  %p54_p0 = scmp.ne.s32.totalorder %s1320_s23, %s1316_s22 }
  0x17   : > { %p1820_p1 = scmp.eq.s32.totalorder %s1340_s28, 0  ;;  %p60_p2 = scmp.ne.s32.totalorder %s1316_s22, %s1312_s21 }
  0x18   : > { %p1449_p3 = scmp.eq.s32.totalorder %s866_s29, 0  ;;  %p1459_p5 = scmp.eq.s32.totalorder %s866_s29, 3 }
  0x19   : > { %p1455_p4 = por %p1820_p1, %p54_p0  ;;  %p1469_p7 = scmp.eq.s32.totalorder %s867_s30, 3 }
  0x1a   : > { %s1847_s10 = scalar_select %p1459_p5, 1, 0 }
  0x1b   : > { %p1465_p6 = por %p1449_p3, %p60_p2  ;;  %p1475_p8 = por %p1459_p5, %p54_p0 }
  0x1c   : > { %s1849_s12 = scalar_select %p1469_p7, 1, 0 }
  0x1d   : > { %s1848_s11 = scalar_select %p1465_p6, 1, 0 }
  0x1e   : > { %s1850_s13 = scalar_select %p1475_p8, 1, 0 }
  0x1f   : > { %p1481_p9 = por %p1469_p7, %p60_p2  ;;  %p1819_p10 = scmp.lt.s32.totalorder %s1340_s28, 4 }
  0x20   : > { %1851 = sst [smem:[#allocation18_spill]] %s1850_s13  ;;  %s218_s15 = sand.u32 1, %s1320_s23  }
  0x21   : > { %s1852_s14 = scalar_select %p1481_p9, 1, 0 }
  0x22   : > { %s910_s16 = sshll.u32 %s1336_s27, 8  ;;  %s870_s17 = sshll.u32 %s218_s15, 4 }
  0x23   : > { %1853 = sst [smem:[#allocation19_spill]] %s1852_s14  ;;  %s1854_s0 = sld [smem:[#allocation23_spill]] }
  0x24   : > { %s222_s6 = scalar_lea.vmem [#allocation3], %s870_s17  ;;  %p1497_p11 = pnand %p1819_p10, %p1455_p4 }
  0x25   : > { %s229_s21 = sshll.u32 %s222_s6, 4  ;;  %s1503_s14 = scalar_lea.sflag [#allocation4], %s218_s15  ;;  %s1501_s21 = int_to_ptr.vmem [resolvable:$true] %s229_s21 }
  0x26   : > { %p1124_p13 = pneg %p1497_p11 }
  0x29   : > { %s1491_s7 = scalar_lea.hbm %s1854_s0, %s910_s16  ;;  %s1127_s17 = scalar_lea.hbm %s1854_s0, 512 }
  0x2a   : > { %s1122_s16 = scalar_lea.hbm %s1491_s7, 256  ;;  %p1128_p4 = scmp.lt.u32.totalorder %s1491_s7, %s1854_s0 }
  0x2b   : > { %p1123_p12 = scmp.ne.s32.totalorder %s1491_s7, %s1122_s16  ;;  %p1129_p10 = scmp.lt.u32.totalorder %s1127_s17, %s1122_s16 }
  0x2c   : > { %p1131_p9 = scmp.lt.u32.totalorder %s1122_s16, %s1491_s7 }
  0x2d   : > { %p1125_p0 = pnand %p1124_p13, %p1123_p12  ;;  %p1130_p1 = por %p1129_p10, %p1128_p4 }
  0x2f   : > { %p1126_p2 = pneg %p1125_p0  ;;  %p1132_p8 = por %p1131_p9, %p1130_p1 }
  0x31   : > { %p1133_p6 = pnand %p1132_p8, %p1126_p2 }
  0x33   : > { %1136 = shalt.err (!%p1133_p6)
}
  0x34   : > { %s1137_s15 = scalar_lea.vmem %s1501_s21, 256  ;;  %s1342_s6 = smov [#allocation3]  }
  0x35   : > { %p1138_p12 = scmp.ne.s32.totalorder %s1501_s21, %s1137_s15  ;;  %s1142_s9 = sshll.u32 %s1342_s6, 4  ;;  %s1143_s9 = int_to_ptr.vmem [resolvable:$false] %s1142_s9 }
  0x36   : > { %s1144_s29 = scalar_lea.vmem %s1143_s9, 512  ;;  %p1145_p5 = scmp.lt.s32.totalorder %s1501_s21, %s1143_s9 }
  0x37   : > { %p1140_p0 = pnand %p1138_p12, %p1124_p13  ;;  %p1146_p10 = scmp.lt.s32.totalorder %s1144_s29, %s1137_s15 }
  0x39   : > { %p1141_p7 = pneg %p1140_p0  ;;  %p1147_p4 = por %p1146_p10, %p1145_p5 }
  0x3b   : > { %p1148_p1 = pnand %p1147_p4, %p1141_p7 }
  0x3d   : > { %1151 = shalt.err (!%p1148_p1)
}
  0x3e   : > { %s1825_s16 = smov 128   ;;  %s1344_s17 = smov 8  }
  0x3f   : > { %988 = dma.hbm_to_vmem [thread:$0]  (!%p1497_p11), %s1491_s7, 256, %s1501_s21, %s1503_s14, %s1825_s16, %s1825_s16, %s1344_s17  }
  0x40   : > { %p877_p5 = scmp.ge.s32.totalorder %s1340_s28, 1  ;;  %p276_p6 = scmp.lt.s32.totalorder %s1340_s28, 5 }
  0x41   : > { %s37_s15 = sadd.s32 1, %s1332_s26  ;;  %s75_s6 = sadd.s32 1, %s1308_s20 }
  0x42   : > { %p1535_p7 = pnand %p877_p5, %p276_p6  ;;  %p38_p8 = scmp.ge.s32.totalorder %s37_s15, 2 }
  0x43   : > { %p82_p9 = scmp.ne.s32.totalorder %s1308_s20, %s1304_s19  ;;  %p88_p13 = scmp.ne.s32.totalorder %s1304_s19, %s1300_s18 }
  0x44   : > { %s1905_s15 = smov (%p38_p8, %s37_s15), 0  ;;  %s1858_s5 = sadd.s32 1, %s1336_s27 }
  0x45   : > { %1857 = sst [smem:[#allocation20_spill]] %s1905_s15  ;;  %s1907_s5 = smov (!%p38_p8, %s1858_s5), %s1336_s27 }
  0x46   : > { %s71_s21 = ssub.s32 %s1332_s26, %s1905_s15  ;;  %p1859_p11 = scmp.eq.s32.totalorder %s1340_s28, 0 }
  0x47   : > { %p42_p12 = scmp.ge.s32.totalorder %s1907_s5, 2  ;;  %p1560_p0 = por %p88_p13, %p1449_p3 }
  0x48   : > { %p1554_p2 = por %p82_p9, %p1859_p11  ;;  %p1862_p10 = scmp.ne.s32.totalorder %s1847_s10, 0 }
  0x49   : > { %s1861_s14 = scalar_select %p1560_p0, 1, 0 }
  0x4a   : > { %p1566_p4 = por %p1862_p10, %p82_p9  ;;  %p1865_p1 = scmp.ne.s32.totalorder %s1849_s12, 0 }
  0x4b   : > { %s1909_s5 = smov (%p42_p12, %s1907_s5), 0  ;;  %s239_s8 = sand.u32 1, %s1308_s20  }
  0x4c   : > { %s1863_s9 = scalar_select %p1566_p4, 1, 0 }
  0x4d   : > { %p1572_p5 = por %p1865_p1, %p88_p13  ;;  %s911_s17 = sshll.u32 %s1336_s27, 6 }
  0x4e   : > { %1864 = sst [smem:[#allocation21_spill]] %s1863_s9  ;;  %s44_s16 = ssub.s32 %s1336_s27, %s1909_s5 }
  0x4f   : > { %s1866_s29 = scalar_select %p1572_p5, 1, 0 }
  0x50   : > { %p45_p3 = scmp.eq.s32.totalorder %s44_s16, 0  ;;  %s72_s0 = sor.u32 %s71_s21, %s44_s16 }
  0x51   : > { %1867 = sst [smem:[#allocation22_spill]] %s1866_s29  ;;  %p73_p6 = scmp.eq.s32.totalorder %s72_s0, 0 }
  0x52   : > { %s873_s10 = sshll.u32 %s239_s8, 7  ;;  %s1868_s15 = sadd.s32 1, %s1320_s23 }
  0x53   : > { %s1585_s18 = scalar_select %p45_p3, %s1320_s23, %s1868_s15  }
  0x54   : > { %s1588_s12 = scalar_select %p73_p6, %s1308_s20, %s75_s6  }
  0x55   : > { %s249_s9 = sadd.s32 %s1332_s26, %s911_s17  ;;  %s243_s29 = scalar_lea.vmem [#allocation6], %s873_s10 }
  0x56   : > { %s876_s4 = sshll.u32 %s249_s9, 6  ;;  %s252_s13 = sshll.u32 %s243_s29, 4  ;;  %s1596_s13 = int_to_ptr.vmem [resolvable:$true] %s252_s13 }
  0x57   : > { %s1869_s1 = sld [smem:[#allocation24_spill]]  ;;  %p1870_p8 = scmp.lt.s32.totalorder %s1340_s28, 4 }
  0x58   : > { %s1606_s16 = scalar_lea.sflag [#allocation7], %s239_s8 }
  0x59   : > { %p1602_p9 = pnand %p1870_p8, %p1554_p2 }
  0x5b   : > { %p1154_p11 = pneg %p1602_p9 }
  0x5d   : > { %s1594_s2 = scalar_lea.hbm %s1869_s1, %s876_s4  ;;  %s1157_s24 = scalar_lea.hbm %s1869_s1, 8192 }
  0x5e   : > { %s1152_s15 = scalar_lea.hbm %s1594_s2, 2048  ;;  %p1158_p2 = scmp.lt.u32.totalorder %s1594_s2, %s1869_s1 }
  0x5f   : > { %p1153_p13 = scmp.ne.s32.totalorder %s1594_s2, %s1152_s15  ;;  %p1159_p1 = scmp.lt.u32.totalorder %s1157_s24, %s1152_s15 }
  0x60   : > { %p1161_p6 = scmp.lt.u32.totalorder %s1152_s15, %s1594_s2 }
  0x61   : > { %p1155_p12 = pnand %p1154_p11, %p1153_p13  ;;  %p1160_p3 = por %p1159_p1, %p1158_p2 }
  0x63   : > { %p1156_p10 = pneg %p1155_p12  ;;  %p1162_p8 = por %p1161_p6, %p1160_p3 }
  0x65   : > { %p1163_p5 = pnand %p1162_p8, %p1156_p10 }
  0x67   : > { %1166 = shalt.err (!%p1163_p5)
}
  0x68   : > { %s1167_s7 = scalar_lea.vmem %s1596_s13, 2048  ;;  %s1345_s9 = smov [#allocation6]  }
  0x69   : > { %p1168_p13 = scmp.ne.s32.totalorder %s1596_s13, %s1167_s7  ;;  %s1172_s29 = sshll.u32 %s1345_s9, 4  ;;  %s1173_s29 = int_to_ptr.vmem [resolvable:$false] %s1172_s29 }
  0x6a   : > { %s1174_s8 = scalar_lea.vmem %s1173_s29, 4096  ;;  %p1175_p0 = scmp.lt.s32.totalorder %s1596_s13, %s1173_s29 }
  0x6b   : > { %p1170_p12 = pnand %p1168_p13, %p1154_p11  ;;  %p1176_p2 = scmp.lt.s32.totalorder %s1174_s8, %s1167_s7 }
  0x6d   : > { %p1171_p4 = pneg %p1170_p12  ;;  %p1177_p1 = por %p1176_p2, %p1175_p0 }
  0x6f   : > { %p1178_p3 = pnand %p1177_p1, %p1171_p4 }
  0x71   : > { %1181 = shalt.err (!%p1178_p3)
}
  0x72   : > { %s1346_s17 = smov 64   ;;  %s1347_s10 = smov 4  }
  0x73   : > { %s1872_s15 = smov 128   ;;  %280 = sbr.rel (%p1535_p7) target bundleno = 608 (0x260), region = 36 }
  0x74   : > { %991 = dma.hbm_to_vmem [thread:$0]  (!%p1602_p9), %s1594_s2, 2048, %s1596_s13, %s1606_s16, %s1872_s15, %s1346_s17, %s1347_s10  }
  0x75   : > { %s1638_s3 = sand.u32 (!%p1535_p7), 1, %s1316_s22   ;;  %p1873_p0 = scmp.ne.s32.totalorder (!%p1535_p7), %s1848_s11, 0 }
  0x76   : > { %s878_s4 = sshll.u32 (!%p1535_p7), %s1638_s3, 4  ;;  %s283_s24 = scalar_lea.sflag (!%p1535_p7), [#allocation4], %s1638_s3 }
  0x77   : > { %s286_s6 = scalar_lea.vmem (!%p1535_p7), [#allocation3], %s878_s4 }
  0x7a   : > { %1283 = dma.done.wait (%p1873_p0), %s283_s24, 256  }
  0x7b   : > { %1285 = vsyncadd (%p1873_p0), %s283_s24, 4294967040  ;;  %s1647_s2 = sand.u32 1, %s1304_s19   ;;  %p1874_p7 = scmp.ne.s32.totalorder %s1861_s14, 0 }
  0x7c   : > { %s879_s13 = sshll.u32 %s1647_s2, 7  ;;  %s292_s30 = scalar_lea.sflag [#allocation7], %s1647_s2 }
  0x7d   : > { %s1651_s0 = scalar_lea.vmem [#allocation6], %s879_s13 }
  0x7e   : > { %1287 = dma.done.wait (%p1874_p7), %s292_s30, 2048  }
  0x7f   : > { %1289 = vsyncadd (%p1874_p7), %s292_s30, 4294965248  ;;  %s881_s16 = sshll.u32 %s1647_s2, 4  ;;  %s882_s11 = sshll.u32 %s1328_s25, 1 }
  0x80   : > { %p343_p4 = scmp.lt.s32.totalorder %s882_s11, 3  ;;  %s1875_s9 = sld [smem:[#allocation25_spill]] }
  0x81   : > { %s1876_s10 = sld [smem:[#allocation26_spill]]  ;;  %s1669_s24 = scalar_lea.vmem [#allocation8], %s878_s4 }
  0x82   : > { %s1911_s11 = smov (!%p343_p4, %s882_s11), 3  ;;  %s1671_s14 = scalar_lea.vmem [#allocation9], %s881_s16 }
  0x83   : > { %s1877_s13 = sld [smem:[#allocation17_spill]] }
  0x86   : > { %s1662_s29 = scalar_lea.vmem %s1875_s9, %s1911_s11 }
  0x87   : > { %s1667_s15 = scalar_lea.vmem %s1876_s10, %s1911_s11 }
  0x89   : > { %p884_p5 = scmp.ne.s32.totalorder %s1877_s13, 0 }
  0x8a   : > { %v359_v0 = vld [vmem:[%s286_s6] sm:$0xff] (!%p884_p5)  ;;  %v360_v3 = vld [vmem:[%s286_s6 + $0x8] sm:$0xff] (!%p884_p5)  ;;  %v412_v38 = vlaneseq (!%p884_p5) }
  0x8b   : > { %358 = sbr.rel (%p884_p5) target bundleno = 346 (0x15a), region = 48  ;;  %v365_v1 = vrot.slane (!%p884_p5), %v359_v0, 4  ;;  %v380_v2 = vmul.f32 (!%p884_p5), %v359_v0, %v359_v0  ;;  %v371_v4 = vrot.slane (!%p884_p5), %v360_v3, 4  ;;  %v381_v5 = vmul.f32 (!%p884_p5), %v360_v3, %v360_v3  ;;  %v361_v40 = vld [vmem:[%s1662_s29] sm:$0x1] (!%p884_p5) }
  0x8c   : > { %v413_v39 = vshrl.u32 (!%p884_p5), %v412_v38, 7  ;;  %v362_v42 = vld [vmem:[%s1662_s29 + $0x1] sm:$0x1] (!%p884_p5)  ;;  %v363_v46 = vld [vmem:[%s1667_s15] sm:$0x1] (!%p884_p5) }
  0x8d   : > { %v366_v6 = vadd.f32 (!%p884_p5), %v365_v1, %v359_v0  ;;  %v382_v7 = vrot.slane (!%p884_p5), %v380_v2, 4  ;;  %v372_v8 = vadd.f32 (!%p884_p5), %v371_v4, %v360_v3  ;;  %v388_v9 = vrot.slane (!%p884_p5), %v381_v5, 4  ;;  %v364_v50 = vld [vmem:[%s1667_s15 + $0x1] sm:$0x1] (!%p884_p5) }
  0x8e   : > { %v414_v41 = vsub.s32 (!%p884_p5), 0, %v413_v39 }
  0x8f   : > { %v367_v10 = vrot.slane (!%p884_p5), %v366_v6, 2  ;;  %v383_v11 = vadd.f32 (!%p884_p5), %v382_v7, %v380_v2  ;;  %v373_v12 = vrot.slane (!%p884_p5), %v372_v8, 2  ;;  %v389_v13 = vadd.f32 (!%p884_p5), %v388_v9, %v381_v5 }
  0x91   : > { %v368_v14 = vadd.f32 (!%p884_p5), %v367_v10, %v366_v6  ;;  %v384_v15 = vrot.slane (!%p884_p5), %v383_v11, 2  ;;  %v374_v16 = vadd.f32 (!%p884_p5), %v373_v12, %v372_v8  ;;  %v390_v17 = vrot.slane (!%p884_p5), %v389_v13, 2 }
  0x93   : > { %v369_v18 = vrot.slane %v368_v14, 1  ;;  %v385_v19 = vadd.f32 %v384_v15, %v383_v11  ;;  %v375_v20 = vrot.slane %v374_v16, 1  ;;  %v391_v21 = vadd.f32 %v390_v17, %v389_v13 }
  0x95   : > { %v370_v22 = vadd.f32 %v369_v18, %v368_v14  ;;  %v386_v23 = vrot.slane %v385_v19, 1  ;;  %v376_v24 = vadd.f32 %v375_v20, %v374_v16  ;;  %v392_v25 = vrot.slane %v391_v21, 1 }
  0x97   : > { %v378_v26 = vmul.f32 0.125, %v370_v22  ;;  %v387_v27 = vadd.f32 %v386_v23, %v385_v19  ;;  %v379_v28 = vmul.f32 0.125, %v376_v24  ;;  %v393_v29 = vadd.f32 %v392_v25, %v391_v21 }
  0x99   : > { %v394_v30 = vmul.f32 0.125, %v387_v27  ;;  %v396_v31 = vmul.f32 %v378_v26, %v378_v26  ;;  %v395_v32 = vmul.f32 0.125, %v393_v29  ;;  %v397_v33 = vmul.f32 %v379_v28, %v379_v28 }
  0x9b   : > { %v398_v34 = vsub.f32 %v394_v30, %v396_v31  ;;  %v399_v35 = vsub.f32 %v395_v32, %v397_v33 }
  0x9d   : > { %v400_v36 = vadd.f32 1e-05, %v398_v34  ;;  %v401_v37 = vadd.f32 1e-05, %v399_v35 }
  0x9f   : > { %1098 = vrsqrt.f32 %v400_v36 }
  0xa0   : > { %1100 = vrsqrt.f32 %v401_v37 }
  0xa9   : > { %v1099_v43 = vpop.eup %1098 }
  0xaa   : > { %v1101_v44 = vpop.eup %1100  ;;  %v404_v45 = vmul.f32 %v1099_v43, %v361_v40 }
  0xab   : > { %v405_v47 = vmul.f32 %v1101_v44, %v362_v42 }
  0xac   : > { %v406_v48 = vmul.f32 %v404_v45, %v378_v26  ;;  %v415_v49 = vrot.slane %v404_v45, %v414_v41 }
  0xad   : > { %v407_v51 = vmul.f32 %v405_v47, %v379_v28  ;;  %v419_v52 = vrot.slane %v405_v47, %v414_v41 }
  0xae   : > { %v408_v53 = vsub.f32 %v363_v46, %v406_v48  ;;  %v422_v54 = vmul.f32 %v415_v49, %v359_v0 }
  0xaf   : > { %v409_v55 = vsub.f32 %v364_v50, %v407_v51  ;;  %v423_v56 = vmul.f32 %v419_v52, %v360_v3 }
  0xb0   : > { %v429_v57 = vrot.slane %v408_v53, %v414_v41 }
  0xb1   : > { %v433_v58 = vrot.slane %v409_v55, %v414_v41 }
  0xb2   : > { %v436_v59 = vadd.f32 %v429_v57, %v422_v54 }
  0xb3   : > { %v437_v60 = vadd.f32 %v433_v58, %v423_v56 }
  0xb4   : > { %v438_v61 = vmul.f32 %v436_v59, %v436_v59 }
  0xb5   : > { %v439_v62 = vmul.f32 %v437_v60, %v437_v60 }
  0xb6   : > { %440 = vadd.xlane.f32.xlu0 %v438_v61 }
  0xba   : > { %442 = vadd.xlane.f32.xlu0 %v439_v62 }
 0x143   : > { %v441_v63 = vpop.xlane.xlu0 %440 }
 0x144   : > { %v444_v1 = vmax.f32 %v441_v63, 1e-24 }
 0x146   : > { %1102 = vrsqrt.f32 %v444_v1 }
 0x147   : > { %v443_v2 = vpop.xlane.xlu0 %442 }
 0x148   : > { %v445_v4 = vmax.f32 %v443_v2, 1e-24 }
 0x14a   : > { %1104 = vrsqrt.f32 %v445_v4 }
 0x150   : > { %v1103_v5 = vpop.eup %1102 }
 0x151   : > { %v448_v0 = vmul.f32 %v1103_v5, %v436_v59 }
 0x153   : > { %450 = vst [vmem:[%s1669_s24] sm:$0xff] %v448_v0 }
 0x154   : > { %v1105_v3 = vpop.eup %1104 }
 0x155   : > { %v449_v6 = vmul.f32 %v1105_v3, %v437_v60 }
 0x157   : > { %451 = vst [vmem:[%s1669_s24 + $0x8] sm:$0xff] %v449_v6  ;;  %v917_v7 = vpack.c.bf16 %v449_v6, %v448_v0 }
 0x159   : > { %918 = vst [vmem:[#allocation2] sm:$0xff] %v917_v7  }
 0x15a PF: > { %v1106_v8 = vld [vmem:[%s1651_s0] sm:$0xff]   ;;  %v1348_v9 = vmov 0.0   ;;  %v1108_v11 = vld [vmem:[%s1651_s0 + $0x8] sm:$0xff]   ;;  %vm1349_vm0 = vmmov 0   ;;  %v1110_v13 = vld [vmem:[%s1651_s0 + $0x10] sm:$0xff]   ;;  %s1878_s4 = sld [smem:[#allocation18_spill]] }
 0x15b   : > { %937 = vmatprep.subr.bf16.mxu0 %v1348_v9  ;;  %957 = vmatprep.subr.bf16.mxu1 %v1348_v9  ;;  %v1107_v10 = vld [vmem:[%s1651_s0 + $0x40] sm:$0xff]   ;;  %v1109_v12 = vld [vmem:[%s1651_s0 + $0x48] sm:$0xff]   ;;  %v1111_v14 = vld [vmem:[%s1651_s0 + $0x50] sm:$0xff]   ;;  %s912_s6 = sshll.u32 %s1328_s25, 8  ;;  %s687_s30 = sshll.u32 %s1669_s24, 4  ;;  %s1703_s30 = int_to_ptr.vmem [resolvable:$true] %s687_s30 }
 0x15c   : > { %938 = vmatpush3.bf16.msra.mxu0 %v1106_v8  ;;  %953 = vmatprep.mubr.msk.bf16.mxu0 %vm1349_vm0, %v1348_v9  ;;  %v1112_v15 = vld [vmem:[%s1651_s0 + $0x18] sm:$0xff]   ;;  %v1114_v17 = vld [vmem:[%s1651_s0 + $0x20] sm:$0xff]   ;;  %v1116_v19 = vld [vmem:[%s1651_s0 + $0x28] sm:$0xff]   ;;  %s1879_s21 = sld [smem:[#allocation27_spill]]  ;;  %s1182_s29 = scalar_lea.vmem %s1703_s30, 256 }
 0x15d   : > { %958 = vmatpush3.bf16.msra.mxu1 %v1107_v10  ;;  %939 = vmatprep.subr.bf16.mxu0 %v1348_v9  ;;  %v1113_v16 = vld [vmem:[%s1651_s0 + $0x58] sm:$0xff]   ;;  %v1115_v18 = vld [vmem:[%s1651_s0 + $0x60] sm:$0xff]   ;;  %v1117_v20 = vld [vmem:[%s1651_s0 + $0x68] sm:$0xff]   ;;  %p1183_p9 = scmp.ne.s32.totalorder %s1703_s30, %s1182_s29  ;;  %s1350_s8 = smov [#allocation8]  }
 0x15e   : > { %959 = vmatprep.subr.bf16.mxu1 %v1348_v9  ;;  %973 = vmatprep.mubr.msk.bf16.mxu1 %vm1349_vm0, %v1348_v9  ;;  %v1118_v21 = vld [vmem:[%s1651_s0 + $0x30] sm:$0xff]   ;;  %v1120_v23 = vld [vmem:[%s1651_s0 + $0x38] sm:$0xff]   ;;  %s1186_s17 = sshll.u32 %s1350_s8, 4  ;;  %s1187_s17 = int_to_ptr.vmem [resolvable:$false] %s1186_s17 }
 0x15f   : > { %v1119_v22 = vld [vmem:[%s1651_s0 + $0x70] sm:$0xff]   ;;  %v1121_v24 = vld [vmem:[%s1651_s0 + $0x78] sm:$0xff]   ;;  %s669_s0 = scalar_lea.sflag [#allocation5], %s1638_s3  ;;  %s1188_s10 = scalar_lea.vmem %s1187_s17, 512 }
 0x160   : > { %940 = vmatpush3.bf16.msra.mxu0 %v1108_v11  ;;  %v488_v25 = vld [vmem:[#allocation2] sm:$0xf]  ;;  %v489_v26 = vld [vmem:[#allocation2 + $0x4] sm:$0xf]  ;;  %p1881_p11 = scmp.ne.s32.totalorder %s1878_s4, 0  ;;  %p1189_p8 = scmp.lt.s32.totalorder %s1703_s30, %s1187_s17 }
 0x161   : > { %960 = vmatpush3.bf16.msra.mxu1 %v1109_v12  ;;  %941 = vmatprep.subr.bf16.mxu0 %v1348_v9  ;;  %p1190_p13 = scmp.lt.s32.totalorder %s1188_s10, %s1182_s29 }
 0x162   : > { %961 = vmatprep.subr.bf16.mxu1 %v1348_v9  ;;  %s1880_s7 = smov %s1879_s21  ;;  %s1701_s9 = scalar_lea.hbm %s1879_s21, %s912_s6 }
 0x163   : > { %p1184_p10 = pnand %p1183_p9, %p1881_p11  ;;  %p1191_p12 = por %p1190_p13, %p1189_p8 }
 0x164   : > { %942 = vmatpush3.bf16.msra.mxu0 %v1110_v13 }
 0x165   : > { %962 = vmatpush3.bf16.msra.mxu1 %v1111_v14  ;;  %943 = vmatprep.subr.bf16.mxu0 %v1348_v9  ;;  %p1185_p6 = pneg %p1184_p10 }
 0x166   : > { %963 = vmatprep.subr.bf16.mxu1 %v1348_v9 }
 0x167   : > { %p1192_p2 = pnand %p1191_p12, %p1185_p6 }
 0x168   : > { %944 = vmatpush3.bf16.msra.mxu0 %v1112_v15 }
 0x169   : > { %964 = vmatpush3.bf16.msra.mxu1 %v1113_v16  ;;  %945 = vmatprep.subr.bf16.mxu0 %v1348_v9 }
 0x16a   : > { %965 = vmatprep.subr.bf16.mxu1 %v1348_v9 }
 0x16c   : > { %946 = vmatpush3.bf16.msra.mxu0 %v1114_v17 }
 0x16d   : > { %966 = vmatpush3.bf16.msra.mxu1 %v1115_v18  ;;  %947 = vmatprep.subr.bf16.mxu0 %v1348_v9 }
 0x16e   : > { %967 = vmatprep.subr.bf16.mxu1 %v1348_v9 }
 0x170   : > { %948 = vmatpush3.bf16.msra.mxu0 %v1116_v19 }
 0x171   : > { %968 = vmatpush3.bf16.msra.mxu1 %v1117_v20  ;;  %949 = vmatprep.subr.bf16.mxu0 %v1348_v9 }
 0x172   : > { %969 = vmatprep.subr.bf16.mxu1 %v1348_v9 }
 0x174   : > { %950 = vmatpush3.bf16.msra.mxu0 %v1118_v21 }
 0x175   : > { %970 = vmatpush3.bf16.msra.mxu1 %v1119_v22  ;;  %951 = vmatprep.subr.bf16.mxu0 %v1348_v9 }
 0x176   : > { %971 = vmatprep.subr.bf16.mxu1 %v1348_v9 }
 0x178   : > { %952 = vmatpush3.bf16.msra.mxu0 %v1120_v23 }
 0x179   : > { %972 = vmatpush3.bf16.msra.mxu1 %v1121_v24 }
 0x17b   : > { %954 = vmatmul.mubr.bf16.vlgmr.msra.gmra.mrb[0].mxu0 %v488_v25 }
 0x17c   : > { %974 = vmatmul.mubr.bf16.vlgmr.msra.gmra.mrb[0].mxu1 %v489_v26 }
 0x17d   : > { %1195 = shalt.err (!%p1192_p2)
}
 0x17e   : > { %s1196_s15 = scalar_lea.hbm %s1701_s9, 256  ;;  %s1200_s6 = scalar_lea.hbm %s1880_s7, 512 }
 0x17f   : > { %p1197_p1 = scmp.ne.s32.totalorder %s1701_s9, %s1196_s15  ;;  %p1201_p7 = scmp.lt.u32.totalorder %s1701_s9, %s1880_s7 }
 0x180   : > { %p1202_p4 = scmp.lt.u32.totalorder %s1200_s6, %s1196_s15  ;;  %p1204_p9 = scmp.lt.u32.totalorder %s1196_s15, %s1701_s9 }
 0x181   : > { %p1198_p3 = pnand %p1197_p1, %p1881_p11 }
 0x182   : > { %p1203_p5 = por %p1202_p4, %p1201_p7 }
 0x183   : > { %p1199_p0 = pneg %p1198_p3 }
 0x184   : > { %p1205_p10 = por %p1204_p9, %p1203_p5 }
 0x186   : > { %p1206_p6 = pnand %p1205_p10, %p1199_p0 }
 0x188   : > { %1209 = shalt.err (!%p1206_p6)
}
 0x189   : > { %s1351_s21 = smov 128   ;;  %s1882_s29 = sld [smem:[#allocation17_spill]] }
 0x18a   : > { %s1352_s8 = smov 8   ;;  %s913_s17 = sshll.u32 %s1328_s25, 2 }
 0x18b   : > { %981 = dma.vmem_to_hbm [thread:$0]  (%p1881_p11), %s1703_s30, 256, %s1701_s9, %s669_s0, %s1351_s21, %s1351_s21, %s1352_s8  }
 0x18c   : > { %s1883_s24 = sld [smem:[#allocation21_spill]]  ;;  %s705_s13 = sshll.u32 %s1671_s14, 4  ;;  %s1740_s13 = int_to_ptr.vmem [resolvable:$true] %s705_s13 }
 0x18d   : > { %s1884_s11 = sld [smem:[#allocation28_spill]]  ;;  %s674_s25 = scalar_lea.sflag [#allocation10], %s1647_s2 }
 0x18e   : > { %s1210_s3 = scalar_lea.vmem %s1740_s13, 256  ;;  %s1353_s4 = smov [#allocation9]  }
 0x18f   : > { %s702_s10 = sadd.s32 %s1882_s29, %s913_s17  ;;  %p1211_p11 = scmp.ne.s32.totalorder %s1740_s13, %s1210_s3 }
 0x190   : > { %s907_s15 = sshll.u32 %s702_s10, 7  ;;  %s1214_s30 = sshll.u32 %s1353_s4, 4  ;;  %s1215_s30 = int_to_ptr.vmem [resolvable:$false] %s1214_s30 }
 0x191   : > { %s1216_s9 = scalar_lea.vmem %s1215_s30, 512  ;;  %p1217_p2 = scmp.lt.s32.totalorder %s1740_s13, %s1215_s30 }
 0x192   : > { %p1885_p8 = scmp.ne.s32.totalorder %s1883_s24, 0  ;;  %p1218_p1 = scmp.lt.s32.totalorder %s1216_s9, %s1210_s3 }
 0x193   : > { %s1738_s1 = scalar_lea.hbm %s1884_s11, %s907_s15 }
 0x194   : > { %p1212_p13 = pnand %p1211_p11, %p1885_p8  ;;  %p1219_p3 = por %p1218_p1, %p1217_p2 }
 0x196   : > { %p1213_p12 = pneg %p1212_p13 }
 0x198   : > { %p1220_p0 = pnand %p1219_p3, %p1213_p12 }
 0x24e   : > { %v572_v27 = vpop.f32.mrb[0].mxu0 }
 0x24f   : > { %666 = vst [vmem:[%s1671_s14] sm:$0xff] %v572_v27  ;;  %v660_v28 = vpop.f32.mrb[0].mxu1  ;;  %v955_v29 = vpop.f32.mrb[1].mxu0 }
 0x250   : > { %667 = vst [vmem:[%s1671_s14 + $0x8] sm:$0xff] %v660_v28  ;;  %v975_v30 = vpop.f32.mrb[1].mxu1  ;;  %v575_v31 = vpop.f32.mrb[2].mxu0 }
 0x251   : > { %v663_v32 = vpop.f32.mrb[2].mxu1  ;;  %v956_v33 = vpop.f32.mrb[3].mxu0 }
 0x252   : > { %1223 = shalt.err (!%p1220_p0)
}
 0x253   : > { %s1224_s14 = scalar_lea.hbm %s1738_s1, 256  ;;  %s1228_s17 = scalar_lea.hbm %s1884_s11, 1024 }
 0x254   : > { %p1225_p7 = scmp.ne.s32.totalorder %s1738_s1, %s1224_s14  ;;  %p1229_p9 = scmp.lt.u32.totalorder %s1738_s1, %s1884_s11 }
 0x255   : > { %p1230_p10 = scmp.lt.u32.totalorder %s1228_s17, %s1224_s14  ;;  %p1232_p11 = scmp.lt.u32.totalorder %s1224_s14, %s1738_s1 }
 0x256   : > { %p1226_p4 = pnand %p1225_p7, %p1885_p8 }
 0x257   : > { %p1231_p6 = por %p1230_p10, %p1229_p9 }
 0x258   : > { %p1227_p5 = pneg %p1226_p4 }
 0x259   : > { %p1233_p13 = por %p1232_p11, %p1231_p6 }
 0x25b   : > { %p1234_p12 = pnand %p1233_p13, %p1227_p5 }
 0x25d   : > { %1237 = shalt.err (!%p1234_p12)
}
 0x25e   : > { %s1354_s6 = smov 256   ;;  %v976_v34 = vpop.f32.mrb[3].mxu1 }
 0x25f   : > { %982 = dma.vmem_to_hbm [thread:$0]  (%p1885_p8), %s1740_s13, 256, %s1738_s1, %s674_s25, %s1351_s21, %s1354_s6, %s1352_s8  }
 0x260 PF: > { %s1886_s16 = sld [smem:[#allocation16_spill]]  ;;  %s1887_s3 = sld [smem:[#allocation19_spill]] }
 0x261   : > { %p1000_p2 = scmp.ge.s32.totalorder %s1340_s28, 2 }
 0x266   : > { %s720_s4 = sand.u32 1, %s1886_s16   ;;  %p1888_p1 = scmp.ne.s32.totalorder %s1887_s3, 0 }
 0x267   : > { %s721_s30 = scalar_lea.sflag [#allocation5], %s720_s4 }
 0x268   : > { %p993_p3 = pnand %p1000_p2, %p1888_p1 }
 0x26a   : > { %1291 = dma.done.wait (!%p993_p3), %s721_s30, 256  }
 0x26b   : > { %1293 = vsyncadd (!%p993_p3), %s721_s30, 4294967040  ;;  %s1889_s24 = sld [smem:[#allocation15_spill]]  ;;  %s1890_s9 = sld [smem:[#allocation22_spill]] }
 0x271   : > { %s729_s14 = sand.u32 1, %s1889_s24   ;;  %p1891_p0 = scmp.ne.s32.totalorder %s1890_s9, 0 }
 0x272   : > { %s730_s2 = scalar_lea.sflag [#allocation10], %s729_s14 }
 0x273   : > { %p996_p7 = pnand %p1000_p2, %p1891_p0 }
 0x275   : > { %1295 = dma.done.wait (!%p996_p7), %s730_s2, 256  }
 0x276   : > { %1297 = vsyncadd (!%p996_p7), %s730_s2, 4294967040  ;;  %s28_s28 = sadd.s32 1, %s1340_s28   ;;  %s1892_s1 = smov %s1585_s18 }
 0x277   : > { %p25_p8 = scmp.ge.s32.totalorder %s28_s28, 6   ;;  %s1893_s8 = sld [smem:[#allocation20_spill]] }
 0x278   : > { %s1894_s18 = smov %s1304_s19  ;;  %s1895_s19 = smov %s1308_s20 }
 0x279   : > { %s1896_s20 = smov %s1588_s12  ;;  %s1897_s21 = smov %s1316_s22 }
 0x27a   : > { %s1898_s22 = smov %s1320_s23  ;;  %s1899_s23 = smov %s1892_s1 }
 0x27b   : > { %s1900_s24 = smov %s1332_s26  ;;  %s1901_s25 = smov %s1336_s27 }
 0x27c   : > { %s1903_s27 = smov %s1909_s5  ;;  %27 = sbr.rel (!%p25_p8) target bundleno = 20 (0x14), region = 121 }
 0x27d   : > { %s1902_s26 = smov %s1893_s8 }
 0x283   :  { %735 = vsyncpa [#allocation4], 1 }
 0x284   :  { %737 = vsyncpa [#allocation4 + $0x1], 1 }
 0x285   :  { %738 = vsyncpa [#allocation7], 1 }
 0x286   :  { %740 = vsyncpa [#allocation7 + $0x1], 1 }
 0x287   :  { %741 = vsyncpa [#allocation5], 1 }
 0x288   :  { %743 = vsyncpa [#allocation5 + $0x1], 1 }
 0x289   :  { %744 = vsyncpa [#allocation10], 1 }
 0x28a   :  { %746 = vsyncpa [#allocation10 + $0x1], 1 }

</bundles_post_ra>
